<compile_context>
chip_gen: v7x
topology: tpu7x:2x2x1
jax: 0.10.0
libtpu: 0.0.40
codegen_flags: <defaults>
</compile_context>

<pallas_src>
import functools
import math
from datetime import datetime, timedelta

import numpy as np
import jax
import jax.numpy as jnp
from jax.experimental import pallas as pl
from jax.experimental.pallas import tpu as pltpu


# ----------------------------------------------------------------------------
# Module buffers (mirror TimeAwarePositionalEncoding.__init__ exactly).
# ----------------------------------------------------------------------------
def _build_buffers(d_model, max_len=5000):
    pe = np.zeros((max_len, d_model), dtype=np.float32)
    position = np.arange(max_len, dtype=np.float32)[:, None]
    div_term = np.exp(np.arange(0, d_model, 2, dtype=np.float32)
                      * (-math.log(10000.0) / d_model))
    pe[:, 0::2] = np.sin(position * div_term)
    pe[:, 1::2] = np.cos(position * div_term)

    day_pe = np.zeros((24, d_model), dtype=np.float32)
    hour_pos = np.arange(24, dtype=np.float32)[:, None]
    day_div = np.exp(np.arange(0, d_model // 4, 2, dtype=np.float32)
                     * (-math.log(10000.0) / (d_model // 4)))
    day_pe[:, 0::2] = np.sin(hour_pos * day_div)
    day_pe[:, 1::2] = np.cos(hour_pos * day_div)

    week_pe = np.zeros((7, d_model), dtype=np.float32)
    day_pos = np.arange(7, dtype=np.float32)[:, None]
    week_div = np.exp(np.arange(0, d_model // 4, 2, dtype=np.float32)
                      * (-math.log(10000.0) / (d_model // 4)))
    week_pe[:, 0::2] = np.sin(day_pos * week_div)
    week_pe[:, 1::2] = np.cos(day_pos * week_div)
    return jnp.asarray(pe), jnp.asarray(day_pe), jnp.asarray(week_pe)


def build_dayweek_table(day_pe, week_pe):
    """Block-diagonal [32, 2*D] table: rows 0..23 -> [day_pe | 0],
    rows 24..30 -> [0 | week_pe], row 31 zero padding.  Precomputed once."""
    D = day_pe.shape[1]
    table = jnp.zeros((32, 2 * D), dtype=jnp.float32)
    table = table.at[0:24, 0:D].set(day_pe.astype(jnp.float32))
    table = table.at[24:31, D:2 * D].set(week_pe.astype(jnp.float32))
    return table


# ----------------------------------------------------------------------------
# Tiling helpers.
# ----------------------------------------------------------------------------
def _round_up(n, m):
    return ((n + m - 1) // m) * m


def _cdiv(a, b):
    return (a + b - 1) // b


def _choose_tiling(S, bytes_per_row, itemsize, x_tile_budget_bytes=4 << 20):
    """Byte-targeted sequence tiling.

    Returns (TILE_S, CHUNK, num_tiles) with:
      * ~4 MiB of x per tile (amortizes the ~0.35 us grid-step overhead while
        keeping the double-buffered footprint small on every TPU generation),
      * TILE_S a multiple of the dtype's sublane packing (8/16/32 rows),
      * >= 2 grid steps whenever S allows, so ("parallel",) dimension
        semantics can shard tiles across v7x's two TensorCores,
      * CHUNK (<= 256 rows) is the compute granularity for the two-hot gather
        so its [rows, 32] intermediates stay well inside the 64-vreg file.
    TILE_S is always a multiple of CHUNK.
    """
    gran = {4: 8, 2: 16, 1: 32}.get(itemsize, 32)
    budget_rows = max(gran, x_tile_budget_bytes // max(bytes_per_row, 1))

    if S <= max(64, 2 * gran):
        # Tiny sequence: single tile, single chunk (a kernel this small is
        # grid-step-overhead bound no matter what; keep it to one step).
        tile = S if S % gran == 0 else _round_up(S, gran)
        return tile, tile, _cdiv(S, tile)

    n_tiles = max(2, _cdiv(S, budget_rows))
    tile = _cdiv(S, n_tiles)
    if tile >= 256:
        chunk = 256
        tile = _round_up(tile, chunk)
    else:
        tile = _round_up(tile, max(gran, 32))
        chunk = tile
    return tile, chunk, _cdiv(S, tile)


def _padded_vmem_bytes(rows, cols, itemsize):
    # Approximate padded VMEM footprint of one buffer (sublane 8, lane 128).
    return _round_up(max(rows, 1), 8) * _round_up(max(cols, 1), 128) * itemsize


# ----------------------------------------------------------------------------
# Kernel.
# ----------------------------------------------------------------------------
def _tape_kernel(x_ref, base_ref, idx_ref, table_ref, out_ref, *, chunk):
    TS, _ = x_ref.shape
    R = table_ref.shape[0]            # 32 (24 hour rows + 7 weekday rows + pad)

    table = table_ref[...]            # [32, 2D] f32, VMEM-resident
    # Hoisted out of the loop (JAX does not CSE broadcast_in_dim).
    row_ids = jax.lax.broadcasted_iota(jnp.int32, (chunk, R), 1)

    n_chunks = TS // chunk            # static

    def body(c, carry):
        r0 = pl.multiple_of(c * chunk, chunk)

        idx = idx_ref[pl.ds(r0, chunk), :]                     # [chunk, 2] i32
        # Fused day+week gather: one "two-hot" [chunk, 32] matrix selects row
        # hour (day half) and row weekday+24 (week half) of the block-diagonal
        # table in a single MXU push -> [chunk, 2D] already in [day | week]
        # lane order.  Exact (weights are 0/1, disjoint halves).
        two_hot = ((row_ids == idx[:, 0:1]) |
                   (row_ids == idx[:, 1:2])).astype(jnp.float32)
        dayweek = jnp.dot(two_hot, table,
                          preferred_element_type=jnp.float32)  # [chunk, 2D]

        base = base_ref[pl.ds(r0, chunk), :].astype(jnp.float32)
        pe = jnp.concatenate([base, dayweek], axis=1)          # [chunk, 3D]

        xv = x_ref[pl.ds(r0, chunk), :].astype(jnp.float32)
        out_ref[pl.ds(r0, chunk), :] = (xv + pe).astype(out_ref.dtype)
        return carry

    jax.lax.fori_loop(0, n_chunks, body, 0, unroll=(n_chunks <= 4))


# ----------------------------------------------------------------------------
# Wrapper.
# ----------------------------------------------------------------------------
def time_aware_positional_encoding(x, hours, weekdays, base_pe, dayweek_table):
    S, three_d = x.shape
    max_len, D = base_pe.shape
    assert three_d == 3 * D, "x must have 3*d_model_3 features"
    assert S <= max_len, "seq_len exceeds max_len"
    two_d = dayweek_table.shape[1]
    assert two_d == 2 * D

    itemsize = jnp.dtype(x.dtype).itemsize
    TILE_S, CHUNK, num_tiles = _choose_tiling(S, three_d * itemsize, itemsize)

    # Merge the two index streams into one [S, 2] int32 input (weekday+24
    # precomputed host-side) -> one small DMA per tile instead of two.
    idx = jnp.stack([hours.astype(jnp.int32),
                     weekdays.astype(jnp.int32) + 24], axis=1)

    # Explicit VMEM budget from the (padded) tile footprints, double-buffered,
    # plus slack for compute temporaries.  Deterministic across v5e/v6e/v7x.
    x_tile_b = _padded_vmem_bytes(TILE_S, three_d, itemsize)
    base_b = _padded_vmem_bytes(TILE_S, D, jnp.dtype(base_pe.dtype).itemsize)
    idx_b = _padded_vmem_bytes(TILE_S, 2, 4)
    tab_b = _padded_vmem_bytes(32, two_d, 4)
    vmem_limit = 2 * (2 * x_tile_b + base_b + idx_b + tab_b) + (8 << 20)
    vmem_limit = max(16 << 20, min(int(vmem_limit), 48 << 20))

    flops = 2 * S * 32 * two_d + S * three_d
    bytes_accessed = (2 * S * three_d * itemsize
                      + S * D * jnp.dtype(base_pe.dtype).itemsize
                      + S * 2 * 4 + 32 * two_d * 4)

    kernel = functools.partial(_tape_kernel, chunk=CHUNK)

    return pl.pallas_call(
        kernel,
        out_shape=jax.ShapeDtypeStruct((S, three_d), x.dtype),
        grid=(num_tiles,),
        in_specs=[
            pl.BlockSpec((TILE_S, three_d), lambda i: (i, 0)),  # x tile
            pl.BlockSpec((TILE_S, D),       lambda i: (i, 0)),  # base_pe window
            pl.BlockSpec((TILE_S, 2),       lambda i: (i, 0)),  # [hour, wd+24]
            pl.BlockSpec((32, two_d),       lambda i: (0, 0)),  # table (resident)
        ],
        out_specs=pl.BlockSpec((TILE_S, three_d), lambda i: (i, 0)),
        compiler_params=pltpu.CompilerParams(
            dimension_semantics=("parallel",),
            vmem_limit_bytes=vmem_limit),
        cost_estimate=pl.CostEstimate(flops=int(flops), transcendentals=0,
                                      bytes_accessed=int(bytes_accessed)),
    )(x, base_pe, idx, dayweek_table)


# ----------------------------------------------------------------------------
# Demo / self-check.
# ----------------------------------------------------------------------------
if __name__ == "__main__":
    # d_model_3 = 8 is a value for which the torch __init__ broadcast
    # assignments are actually valid; the forward needs x with 3*d_model_3
    # features.
    D = 8
    base_pe, day_pe, week_pe = _build_buffers(D)
    dayweek_table = build_dayweek_table(day_pe, week_pe)

    key = jax.random.PRNGKey(0)

    def run_case(S, key):
        kx, key = jax.random.split(key)
        x = jax.random.normal(kx, (S, 3 * D), dtype=jnp.float32)

        # TODO(synk): extraction of .hour / .weekday() from Python datetime
        # objects is host-side glue (as in the torch forward); the kernel takes
        # int32 hour/weekday arrays.
        t0 = datetime(2024, 1, 1, 3, 0, 0)
        timestamps = [t0 + timedelta(hours=5 * i) for i in range(S)]
        hours = jnp.asarray([t.hour for t in timestamps], dtype=jnp.int32)
        weekdays = jnp.asarray([t.weekday() for t in timestamps], dtype=jnp.int32)

        out = jax.block_until_ready(
            time_aware_positional_encoding(x, hours, weekdays,
                                           base_pe, dayweek_table))

        # Pure-numpy reference mirroring the torch forward.
        ref = np.asarray(x) + np.concatenate(
            [np.asarray(base_pe)[:S],
             np.asarray(day_pe)[np.asarray(hours)],
             np.asarray(week_pe)[np.asarray(weekdays)]], axis=1)
        assert np.allclose(np.asarray(out), ref, atol=1e-5), f"mismatch at S={S}"
        return key

    key = run_case(8, key)     # tiny sequence: single-tile path
    key = run_case(200, key)   # multi-tile path: 2 grid steps, partial last tile

    print("KERNEL_OK")
</pallas_src>

<mosaic_0001>
module attributes {stable_mosaic.version = 11 : i64} {
  func.func @_tape_kernel(%arg0: i32, %arg1: memref<8x24xf32, #tpu.memory_space<vmem>>, %arg2: memref<8x8xf32, #tpu.memory_space<vmem>>, %arg3: memref<8x2xi32, #tpu.memory_space<vmem>>, %arg4: memref<32x16xf32, #tpu.memory_space<vmem>>, %arg5: memref<8x24xf32, #tpu.memory_space<vmem>>) attributes {dimension_semantics = [#tpu.dimension_semantics<parallel>], iteration_bounds = array<i64: 1>, scalar_prefetch = 0 : i64, scratch_operands = 0 : i64, tpu.core_type = #tpu.core_type<tc>, window_params = [{transform_indices = @transform_0, window_bounds = array<i64: 8, 24>}, {transform_indices = @transform_1, window_bounds = array<i64: 8, 8>}, {transform_indices = @transform_2, window_bounds = array<i64: 8, 2>}, {pipeline_mode = #tpu.pipeline_mode<synchronous>, transform_indices = @transform_3, window_bounds = array<i64: 32, 16>}, {transform_indices = @transform_4, window_bounds = array<i64: 8, 24>}]} {
    %c0 = arith.constant 0 : index
    %c0_0 = arith.constant 0 : index
    %0 = vector.load %arg4[%c0, %c0_0] : memref<32x16xf32, #tpu.memory_space<vmem>>, vector<32x16xf32>
    %1 = tpu.iota {dimensions = array<i32: 1>} : vector<8x32xi32>
    %c0_i32 = arith.constant 0 : i32
    %c8_i32 = arith.constant 8 : i32
    %2 = arith.muli %c0_i32, %c8_i32 : i32
    %3 = tpu.assume_multiple %2, 8 : i32
    %4 = arith.index_cast %3 : i32 to index
    %c0_1 = arith.constant 0 : index
    %5 = vector.load %arg3[%4, %c0_1] : memref<8x2xi32, #tpu.memory_space<vmem>>, vector<8x2xi32>
    %6 = vector.extract_strided_slice %5 {offsets = [0, 0], sizes = [8, 1], strides = [1, 1]} : vector<8x2xi32> to vector<8x1xi32>
    %7 = vector.broadcast %6 : vector<8x1xi32> to vector<8x32xi32>
    %8 = arith.cmpi eq, %1, %7 : vector<8x32xi32>
    %9 = vector.extract_strided_slice %5 {offsets = [0, 1], sizes = [8, 1], strides = [1, 1]} : vector<8x2xi32> to vector<8x1xi32>
    %10 = vector.broadcast %9 : vector<8x1xi32> to vector<8x32xi32>
    %11 = arith.cmpi eq, %1, %10 : vector<8x32xi32>
    %12 = arith.ori %8, %11 : vector<8x32xi1>
    %13 = arith.extui %12 : vector<8x32xi1> to vector<8x32xi32>
    %14 = arith.sitofp %13 : vector<8x32xi32> to vector<8x32xf32>
    %cst = arith.constant dense<0.000000e+00> : vector<8x16xf32>
    %15 = tpu.matmul %14, %0, %cst {dimension_numbers = #tpu.dot_dimension_numbers<[1], [0], [0], [1], [0, 0, 1, 1], [], []>} : vector<8x32xf32>, vector<32x16xf32>, vector<8x16xf32> -> vector<8x16xf32>
    %16 = arith.index_cast %3 : i32 to index
    %c0_2 = arith.constant 0 : index
    %17 = vector.load %arg2[%16, %c0_2] : memref<8x8xf32, #tpu.memory_space<vmem>>, vector<8x8xf32>
    %18 = tpu.concatenate %17, %15 in 1 : vector<8x8xf32>, vector<8x16xf32> -> vector<8x24xf32>
    %19 = arith.index_cast %3 : i32 to index
    %c0_3 = arith.constant 0 : index
    %20 = vector.load %arg1[%19, %c0_3] : memref<8x24xf32, #tpu.memory_space<vmem>>, vector<8x24xf32>
    %21 = arith.addf %20, %18 : vector<8x24xf32>
    %22 = arith.index_cast %3 : i32 to index
    %c0_4 = arith.constant 0 : index
    %23 = vector.load %arg5[%22, %c0_4] : memref<8x24xf32, #tpu.memory_space<vmem>>, vector<8x24xf32>
    tpu.vector_store %arg5[%22, %c0_4], %21 {strides = array<i32>} : memref<8x24xf32, #tpu.memory_space<vmem>>, vector<8x24xf32>,
    %c1_i32 = arith.constant 1 : i32
    return
  }
  func.func @transform_0(%arg0: i32) -> (i32, i32) {
    %c0_i32 = arith.constant 0 : i32
    %c0_i32_0 = arith.constant 0 : i32
    return %arg0, %c0_i32 : i32, i32
  }
  func.func @transform_1(%arg0: i32) -> (i32, i32) {
    %c0_i32 = arith.constant 0 : i32
    %c0_i32_0 = arith.constant 0 : i32
    return %arg0, %c0_i32 : i32, i32
  }
  func.func @transform_2(%arg0: i32) -> (i32, i32) {
    %c0_i32 = arith.constant 0 : i32
    %c0_i32_0 = arith.constant 0 : i32
    return %arg0, %c0_i32 : i32, i32
  }
  func.func @transform_3(%arg0: i32) -> (i32, i32) {
    %c0_i32 = arith.constant 0 : i32
    %c0_i32_0 = arith.constant 0 : i32
    %c0_i32_1 = arith.constant 0 : i32
    return %c0_i32, %c0_i32_0 : i32, i32
  }
  func.func @transform_4(%arg0: i32) -> (i32, i32) {
    %c0_i32 = arith.constant 0 : i32
    %c0_i32_0 = arith.constant 0 : i32
    return %arg0, %c0_i32 : i32, i32
  }
}

</mosaic_0001>

<bundles_post_ra>
// kernel: tpu_custom_call.1
= control target key start
LH: loop header
LB: loop body
LE: loop exit
PB: predicated region body
PF: predicated region fallthrough
CT: control target
= control target key end

     0   :  { %v192_v3 = vmov 0   ;;  %s257_s0 = inlined_call_operand.vmem [shape: f32[8,24], index: 0, kind: input, shape index: {}]   ;;  %s258_s1 = inlined_call_operand.vmem [shape: f32[5000,8], index: 1, kind: input, shape index: {}]   ;;  %s259_s2 = inlined_call_operand.vmem [shape: s32[8,2], index: 2, kind: input, shape index: {}]   ;;  %s260_s3 = inlined_call_operand.vmem [shape: f32[32,16], index: 3, kind: input, shape index: {}]   ;;  %s261_s4 = inlined_call_operand.hbm [shape: f32[8,24], index: 4, kind: output, shape index: {}]  }
   0x1   :  { %v24_v0 = vld [vmem:[%s259_s2] sm:$0xff]  ;;  %v19_v2 = vld [vmem:[%s260_s3 + $0x8] sm:$0xff]  ;;  %166 = vset.pattern.permute.xlu0 %v192_v3 }
   0x2   :  { %v18_v1 = vld [vmem:[%s260_s3] sm:$0xff] }
   0x3   :  { %v154_v4 = vpack.c.bf16 %v19_v2, %v18_v1 }
   0x4   :  { %9 = vsyncpa [#allocation3], 0  ;;  %26 = vperm.xlu0 %166, %v24_v0   ;;  %v193_v5 = vmov 0.0|0.0   ;;  %v20_v6 = vld [vmem:[%s260_s3 + $0x10] sm:$0xff]  ;;  %v21_v7 = vld [vmem:[%s260_s3 + $0x18] sm:$0xff]  ;;  %v194_v9 = vmov 1   ;;  %v22_v11 = vlaneseq }
   0x5   :  { %153 = vmatprep.subr.bf16.mxu0 %v193_v5  ;;  %v157_v8 = vpack.c.bf16 %v21_v7, %v20_v6  ;;  %vm195_vm0 = vmmov 0   ;;  %v196_v10 = vmov 0.0   ;;  %vm36_vm3 = vcmask 261120   ;;  %s197_s3 = smov 8   ;;  %v110_v18 = vld [vmem:[%s258_s1] sm:$0xff]  ;;  %s198_s28 = smov [#allocation2]  }
   0x6   :  { %155 = vmatpush3.bf16.msra.mxu0 %v154_v4  ;;  %150 = vmatprep.mubr.msk.f32.mxu0 %vm195_vm0, %v196_v10  ;;  %v23_v13 = vand.u32 127, %v22_v11  ;;  %vm115_vm5 = vcmask 64512   ;;  %v117_v19 = vld [vmem:[%s257_s0] sm:$0xff]  ;;  %s127_s29 = sshll.u32 %s198_s28, 4  ;;  %vm119_vm6 = vcmask 195584   ;;  %s128_s29 = int_to_ptr.vmem [resolvable:$true] %s127_s29 }
   0x7   :  { %156 = vmatprep.subr.bf16.mxu0 %v193_v5  ;;  %s168_s30 = scalar_lea.vmem %s128_s29, 128  ;;  %p173_p1 = scmp.lt.s32.totalorder %s128_s29, %s128_s29 }
   0x8   :  { %167 = vset.pattern.permute.xlu0 %v194_v9  ;;  %p169_p0 = scmp.ne.s32.totalorder %s128_s29, %s168_s30  ;;  %p174_p2 = scmp.lt.s32.totalorder %s168_s30, %s168_s30 }
   0x9   :  { %30 = vperm.xlu0 %167, %v24_v0  }
   0xa   :  { %158 = vmatpush3.bf16.msra.mxu0 %v157_v8  ;;  %p175_p3 = por %p174_p2, %p173_p1 }
   0xc   :  { %p176_p4 = pnand %p175_p3, %p169_p0 }
  0x83   :  { %v27_v12 = vpop.permute.xlu0 %26 }
  0x84   :  { %vm28_vm1 = vcmp.eq.s32.totalorder %v23_v13, %v27_v12 }
  0x88   :  { %v31_v14 = vpop.permute.xlu0 %30 }
  0x89   :  { %vm32_vm2 = vcmp.eq.s32.totalorder %v23_v13, %v31_v14 }
  0x8a   :  { %vm33_vm4 = vmor %vm28_vm1, %vm32_vm2 }
  0x8b   :  { %v135_v15 = vsel %vm33_vm4, 1.0, %v196_v10 }
  0x8c   :  { %151 = vmatmul.mubr.msk.f32.vlgmr.msra.gmra.mrb[0].mxu0 %vm36_vm3, %v135_v15 }
 0x15f   :  { %v106_v16 = vpop.f32.mrb[0].mxu0 }
 0x160   :  { %112 = vrot.lane.b32.xlu1 %v106_v16, %s197_s3  ;;  %v152_v17 = vpop.f32.mrb[1].mxu0 }
 0x1d2   :  { %v113_v20 = vpop.permute.xlu1 %112 }
 0x1d3   :  { %v116_v21 = vsel %vm115_vm5, %v110_v18, %v113_v20 }
 0x1d4   :  { %v118_v22 = vadd.f32 %v117_v19, %v116_v21 }
 0x1d6   :  { %120 = vst.msk [vmem:[#allocation2] sm:$0xff] %vm119_vm6, %v118_v22 }
 0x1d7   :  { %179 = shalt.err (!%p176_p4)
}
 0x1d8   :  { %s180_s6 = scalar_lea.hbm %s261_s4, 128 }
 0x1d9   :  { %p181_p5 = scmp.ne.s32.totalorder %s261_s4, %s180_s6  ;;  %p184_p6 = scmp.lt.u32.totalorder %s180_s6, %s261_s4 }
 0x1db   :  { %p186_p7 = pnand %p184_p6, %p181_p5 }
 0x1dd   :  { %189 = shalt.err (!%p186_p7)
}
 0x1de   :  { %130 = dma.vmem_to_hbm [thread:$0]  %s128_s29, 128, %s261_s4, [#allocation3]  }
 0x1df   :  { %190 = dma.done.wait [#allocation3], 128  }
 0x1e0   :  { %191 = vsyncadd [#allocation3], 4294967168 }
 0x1e1   :  { %134 = vsyncpa [#allocation3], 1 }

</bundles_post_ra>
